<compile_context>
chip_gen: v7x
topology: tpu7x:2x2x1
jax: 0.10.0
libtpu: 0.0.40
codegen_flags: <defaults>
</compile_context>

<pallas_src>
import functools

import jax
import jax.numpy as jnp
from jax.experimental import pallas as pl
from jax.experimental.pallas import tpu as pltpu

_LANES = 128
_SUBLANES = 8
_MAX_TILE_ROWS = 2048  # (3, 2048, 128) f32 ~3 MiB / buffer, ~6 MiB double-buffered


def _round_up(a, m):
    return ((a + m - 1) // m) * m


def _sa_loss_kernel(mean_ref, x_ref, o_ref, *, hw, tile_rows, needs_mask):
    """Grid = (batch, spatial_tiles). Accumulates per-image (8,128) partial sums."""
    bi = pl.program_id(0)
    ti = pl.program_id(1)

    # Output block is resident across the (last, "arbitrary") spatial-tile axis.
    @pl.when(ti == 0)
    def _():
        o_ref[...] = jnp.zeros_like(o_ref)

    # Per-image, per-channel means (full-image means, precomputed in wrapper).
    mr = mean_ref[bi, 0]
    mg = mean_ref[bi, 1]
    mb = mean_ref[bi, 2]

    # x_ref: (1, 3, tile_rows, 128) -- each channel is a lane-dense slab.
    dr = x_ref[0, 0] - mr
    dg = x_ref[0, 1] - mg
    db = x_ref[0, 2] - mb

    # Channel reduce = 2 elementwise VPU adds; sqrt goes to the EUP.
    k = jnp.sqrt(dr * dr + dg * dg + db * db)  # (tile_rows, 128)

    if needs_mask:
        # Zero out padded pixels (flattened index >= H*W).
        row = jax.lax.broadcasted_iota(jnp.int32, (tile_rows, _LANES), 0)
        lane = jax.lax.broadcasted_iota(jnp.int32, (tile_rows, _LANES), 1)
        idx = (ti * tile_rows + row) * _LANES + lane
        k = jnp.where(idx < hw, k, 0.0)

    # Fold (tile_rows,128) -> (8,128) with elementwise vreg adds (no XLU reduce,
    # no serial scalar dependency per grid step).
    o_ref[0] += jnp.sum(k.reshape(tile_rows // _SUBLANES, _SUBLANES, _LANES), axis=0)


def sa_loss(x):
    """x: (B, 3, H, W) float32. Returns scalar float32."""
    b, c, h, w = x.shape
    assert c == 3, "Sa_Loss expects 3 channels (r, g, b)"
    x = x.astype(jnp.float32)
    hw = h * w

    # Spatial tiling: flatten H*W onto (rows, 128) lanes; rows tiled in
    # multiples of 8 sublanes, capped so tiles fit comfortably in VMEM on
    # v5e / v6e / v7x.
    rows_needed = -(-hw // _LANES)
    tile_rows = min(_MAX_TILE_ROWS, _round_up(rows_needed, _SUBLANES))
    rows_padded = _round_up(rows_needed, tile_rows)
    num_tiles = rows_padded // tile_rows
    pad = rows_padded * _LANES - hw
    needs_mask = pad > 0

    # Full-image per-channel means, computed once in the wrapper and passed to
    # the kernel as a tiny (B, 3) SMEM table.
    # TODO(synk): for images that fit whole in VMEM this costs one extra HBM
    # pass vs. a fused single-pass whole-image kernel.
    means = jnp.mean(x, axis=(2, 3))  # (B, 3) float32

    # Layout plumbing only: (B,3,H,W) -> (B,3,rows_padded,128).
    x_flat = x.reshape(b, c, hw)
    if needs_mask:
        x_flat = jnp.pad(x_flat, ((0, 0), (0, 0), (0, pad)))
    x_tiled = x_flat.reshape(b, c, rows_padded, _LANES)

    kernel = functools.partial(
        _sa_loss_kernel, hw=hw, tile_rows=tile_rows, needs_mask=needs_mask)

    partials = pl.pallas_call(
        kernel,
        out_shape=jax.ShapeDtypeStruct((b, _SUBLANES, _LANES), jnp.float32),
        grid_spec=pltpu.PrefetchScalarGridSpec(
            num_scalar_prefetch=0,
            grid=(b, num_tiles),
            in_specs=[
                # (B, 3) per-image channel means -> SMEM (whole array).
                pl.BlockSpec(memory_space=pltpu.MemorySpace.SMEM),
                # Lane/sublane-dense spatial tile, one image at a time.
                pl.BlockSpec((1, c, tile_rows, _LANES),
                             lambda bi, ti: (bi, 0, ti, 0)),
            ],
            # Per-image (8,128) partial-sum slab, resident across spatial tiles.
            out_specs=pl.BlockSpec((1, _SUBLANES, _LANES),
                                   lambda bi, ti: (bi, 0, 0)),
        ),
        compiler_params=pltpu.CompilerParams(
            # Batch axis parallel (v7x megacore: separate output blocks per
            # image => no cross-core race); reduction (spatial) axis arbitrary
            # and last.
            dimension_semantics=("parallel", "arbitrary"),
            vmem_limit_bytes=32 * 1024 * 1024,
        ),
    )(means, x_tiled)

    # Tiny final reduction + normalization in the wrapper.
    return jnp.sum(partials) / float(b * hw)


def sa_loss_ref(x):
    """Pure-JAX reference mirroring the PyTorch forward."""
    mean_rgb = jnp.mean(x, axis=(2, 3), keepdims=True)
    d = x - mean_rgb
    k = jnp.sqrt(jnp.sum(d * d, axis=1, keepdims=True))
    return jnp.mean(k)


if __name__ == "__main__":
    key = jax.random.PRNGKey(0)
    # batch=2, channels=3 (r,g,b as the forward requires), spatial=16x16
    x = jax.random.uniform(key, (2, 3, 16, 16), dtype=jnp.float32)

    out = jax.block_until_ready(sa_loss(x))
    ref = jax.block_until_ready(sa_loss_ref(x))

    assert jnp.allclose(out, ref, rtol=1e-5, atol=1e-6), (out, ref)
    print("KERNEL_OK")
</pallas_src>

<mosaic_0001>
module attributes {stable_mosaic.version = 11 : i64} {
  func.func @_sa_loss_kernel(%arg0: i32, %arg1: i32, %arg2: memref<2x3xf32, #tpu.memory_space<smem>>, %arg3: memref<1x3x8x128xf32, #tpu.memory_space<vmem>>, %arg4: memref<1x8x128xf32, #tpu.memory_space<vmem>>) attributes {dimension_semantics = [#tpu.dimension_semantics<parallel>, #tpu.dimension_semantics<arbitrary>], iteration_bounds = array<i64: 2, 1>, scalar_prefetch = 0 : i64, scratch_operands = 0 : i64, tpu.core_type = #tpu.core_type<tc>, window_params = [{transform_indices = @transform_0, window_bounds = array<i64: 2, 3>}, {transform_indices = @transform_1, window_bounds = array<i64: 1, 3, 8, 128>}, {transform_indices = @transform_2, window_bounds = array<i64: 1, 8, 128>}]} {
    %c0_i32 = arith.constant 0 : i32
    %0 = arith.cmpi eq, %arg1, %c0_i32 : i32
    %1 = arith.extui %0 : i1 to i32
    %c0_i32_0 = arith.constant 0 : i32
    %2 = arith.cmpi ne, %1, %c0_i32_0 : i32
    scf.if %2 {
      %cst_20 = arith.constant 0.000000e+00 : f32
      %47 = vector.broadcast %cst_20 : f32 to vector<1x8x128xf32>
      %c0_21 = arith.constant 0 : index
      %c0_22 = arith.constant 0 : index
      %c0_23 = arith.constant 0 : index
      %48 = vector.load %arg4[%c0_21, %c0_22, %c0_23] : memref<1x8x128xf32, #tpu.memory_space<vmem>>, vector<1x8x128xf32>
      tpu.vector_store %arg4[%c0_21, %c0_22, %c0_23], %47 {strides = array<i32>} : memref<1x8x128xf32, #tpu.memory_space<vmem>>, vector<1x8x128xf32>,
    } else {
    }
    %3 = arith.index_cast %arg0 : i32 to index
    %c0 = arith.constant 0 : index
    %4 = memref.load %arg2[%3, %c0] : memref<2x3xf32, #tpu.memory_space<smem>>
    %5 = arith.index_cast %arg0 : i32 to index
    %c1 = arith.constant 1 : index
    %6 = memref.load %arg2[%5, %c1] : memref<2x3xf32, #tpu.memory_space<smem>>
    %7 = arith.index_cast %arg0 : i32 to index
    %c2 = arith.constant 2 : index
    %8 = memref.load %arg2[%7, %c2] : memref<2x3xf32, #tpu.memory_space<smem>>
    %c0_1 = arith.constant 0 : index
    %c0_2 = arith.constant 0 : index
    %c0_3 = arith.constant 0 : index
    %c0_4 = arith.constant 0 : index
    %9 = vector.load %arg3[%c0_1, %c0_2, %c0_3, %c0_4] : memref<1x3x8x128xf32, #tpu.memory_space<vmem>>, vector<1x1x8x128xf32>
    %10 = vector.shape_cast %9 : vector<1x1x8x128xf32> to vector<8x128xf32>
    %11 = vector.broadcast %4 : f32 to vector<8x128xf32>
    %12 = arith.subf %10, %11 : vector<8x128xf32>
    %c0_5 = arith.constant 0 : index
    %c1_6 = arith.constant 1 : index
    %c0_7 = arith.constant 0 : index
    %c0_8 = arith.constant 0 : index
    %13 = vector.load %arg3[%c0_5, %c1_6, %c0_7, %c0_8] : memref<1x3x8x128xf32, #tpu.memory_space<vmem>>, vector<1x1x8x128xf32>
    %14 = vector.shape_cast %13 : vector<1x1x8x128xf32> to vector<8x128xf32>
    %15 = vector.broadcast %6 : f32 to vector<8x128xf32>
    %16 = arith.subf %14, %15 : vector<8x128xf32>
    %c0_9 = arith.constant 0 : index
    %c2_10 = arith.constant 2 : index
    %c0_11 = arith.constant 0 : index
    %c0_12 = arith.constant 0 : index
    %17 = vector.load %arg3[%c0_9, %c2_10, %c0_11, %c0_12] : memref<1x3x8x128xf32, #tpu.memory_space<vmem>>, vector<1x1x8x128xf32>
    %18 = vector.shape_cast %17 : vector<1x1x8x128xf32> to vector<8x128xf32>
    %19 = vector.broadcast %8 : f32 to vector<8x128xf32>
    %20 = arith.subf %18, %19 : vector<8x128xf32>
    %21 = arith.mulf %12, %12 : vector<8x128xf32>
    %22 = arith.mulf %16, %16 : vector<8x128xf32>
    %23 = arith.addf %21, %22 : vector<8x128xf32>
    %24 = arith.mulf %20, %20 : vector<8x128xf32>
    %25 = arith.addf %23, %24 : vector<8x128xf32>
    %26 = math.sqrt %25 : vector<8x128xf32>
    %27 = tpu.iota {dimensions = array<i32: 0>} : vector<8x128xi32>
    %28 = tpu.iota {dimensions = array<i32: 1>} : vector<8x128xi32>
    %c8_i32 = arith.constant 8 : i32
    %29 = arith.muli %arg1, %c8_i32 : i32
    %30 = vector.broadcast %29 : i32 to vector<8x128xi32>
    %31 = arith.addi %30, %27 : vector<8x128xi32>
    %c128_i32 = arith.constant 128 : i32
    %32 = vector.broadcast %c128_i32 : i32 to vector<8x128xi32>
    %33 = arith.muli %31, %32 : vector<8x128xi32>
    %34 = arith.addi %33, %28 : vector<8x128xi32>
    %c256_i32 = arith.constant 256 : i32
    %35 = vector.broadcast %c256_i32 : i32 to vector<8x128xi32>
    %36 = arith.cmpi slt, %34, %35 : vector<8x128xi32>
    %cst = arith.constant 0.000000e+00 : f32
    %37 = vector.broadcast %cst : f32 to vector<8x128xf32>
    %38 = arith.select %36, %26, %37 : vector<8x128xi1>, vector<8x128xf32>
    %c0_13 = arith.constant 0 : index
    %c0_14 = arith.constant 0 : index
    %c0_15 = arith.constant 0 : index
    %39 = vector.load %arg4[%c0_13, %c0_14, %c0_15] : memref<1x8x128xf32, #tpu.memory_space<vmem>>, vector<1x8x128xf32>
    %40 = vector.shape_cast %39 : vector<1x8x128xf32> to vector<8x128xf32>
    %41 = vector.shape_cast %38 : vector<8x128xf32> to vector<1x8x128xf32>
    %cst_16 = arith.constant dense<0.000000e+00> : vector<8x128xf32>
    %42 = vector.multi_reduction <add>, %41, %cst_16 [0] : vector<1x8x128xf32> to vector<8x128xf32>
    %43 = arith.addf %40, %42 : vector<8x128xf32>
    %c0_17 = arith.constant 0 : index
    %c0_18 = arith.constant 0 : index
    %c0_19 = arith.constant 0 : index
    %44 = vector.load %arg4[%c0_17, %c0_18, %c0_19] : memref<1x8x128xf32, #tpu.memory_space<vmem>>, vector<1x8x128xf32>
    %45 = vector.shape_cast %44 : vector<1x8x128xf32> to vector<8x128xf32>
    %46 = vector.shape_cast %43 : vector<8x128xf32> to vector<1x8x128xf32>
    tpu.vector_store %arg4[%c0_17, %c0_18, %c0_19], %46 {strides = array<i32>} : memref<1x8x128xf32, #tpu.memory_space<vmem>>, vector<1x8x128xf32>,
    return
  }
  func.func @transform_0(%arg0: i32, %arg1: i32) -> (i32, i32) {
    %c0_i32 = arith.constant 0 : i32
    %c0_i32_0 = arith.constant 0 : i32
    %c0_i32_1 = arith.constant 0 : i32
    return %c0_i32, %c0_i32_0 : i32, i32
  }
  func.func @transform_1(%arg0: i32, %arg1: i32) -> (i32, i32, i32, i32) {
    %c0_i32 = arith.constant 0 : i32
    %c0_i32_0 = arith.constant 0 : i32
    %c0_i32_1 = arith.constant 0 : i32
    return %arg0, %c0_i32, %arg1, %c0_i32_0 : i32, i32, i32, i32
  }
  func.func @transform_2(%arg0: i32, %arg1: i32) -> (i32, i32, i32) {
    %c0_i32 = arith.constant 0 : i32
    %c0_i32_0 = arith.constant 0 : i32
    %c0_i32_1 = arith.constant 0 : i32
    return %arg0, %c0_i32, %c0_i32_0 : i32, i32, i32
  }
}

</mosaic_0001>

<bundles_post_ra>
// kernel: tpu_custom_call.1
= control target key start
LH: loop header
LB: loop body
LE: loop exit
PB: predicated region body
PF: predicated region fallthrough
CT: control target
= control target key end

     0   :  { %7 = vsyncpa [#allocation5], 0  ;;  %s798_s0 = inlined_call_operand.hbm [shape: f32[2,3], index: 0, kind: input, shape index: {}]   ;;  %s799_s1 = inlined_call_operand.hbm [shape: f32[2,3,8,128], index: 1, kind: input, shape index: {}]   ;;  %s800_s2 = inlined_call_operand.hbm [shape: f32[2,8,128], index: 2, kind: output, shape index: {}]  }
   0x1   :  { %8 = vsyncpa [#allocation3], 0 }
   0x2   :  { %10 = vsyncpa [#allocation3 + $0x1], 0 }
   0x3   :  { %11 = vsyncpa [#allocation4], 0 }
   0x4   :  { %13 = vsyncpa [#allocation4 + $0x1], 0  ;;  %s592_s9 = smov 0   ;;  %s594_s10 = smov 0  }
   0x5   :  { %s596_s11 = smov 0   ;;  %s598_s12 = smov 0  }
   0x6   :  { %s600_s13 = smov 0   ;;  %s602_s14 = smov 0  }
   0x7 LB: > { %s344_s15 = sadd.s32 4294967295, %s570_s14   ;;  %s345_s16 = sadd.s32 4294967294, %s570_s14   ;;  %s570_s14 = sphi %s602_s14, %s19_s14   ;;  %s566_s13 = sphi %s600_s13, %s820_s13   ;;  %s562_s12 = sphi %s598_s12, %s819_s12   ;;  %s558_s11 = sphi %s596_s11, %s818_s11   ;;  %s554_s10 = sphi %s594_s10, %s817_s10   ;;  %s550_s9 = sphi %s592_s9, %s816_s9  }
   0x8   : > { %s61_s17 = sadd.s32 1, %s558_s11  ;;  %p68_p0 = scmp.ne.s32.totalorder %s558_s11, %s554_s10 }
   0x9   : > { %p69_p1 = scmp.eq.s32.totalorder %s570_s14, 0  ;;  %p74_p2 = scmp.ne.s32.totalorder %s554_s10, %s550_s9 }
   0xa   : > { %p630_p3 = scmp.eq.s32.totalorder %s344_s15, 0  ;;  %p98_p4 = scmp.eq.s32.totalorder %s344_s15, 1 }
   0xb   : > { %p70_p5 = por %p69_p1, %p68_p0  ;;  %p104_p6 = scmp.eq.s32.totalorder %s345_s16, 1 }
   0xc   : > { %s805_s18 = scalar_select %p630_p3, 1, 0 }
   0xd   : > { %p636_p7 = por %p630_p3, %p74_p2  ;;  %p640_p8 = por %p98_p4, %p68_p0 }
   0xe   : > { %p644_p9 = por %p104_p6, %p74_p2  ;;  %p346_p10 = scmp.ge.s32.totalorder %s570_s14, 1 }
   0xf   : > { %s806_s19 = scalar_select %p636_p7, 1, 0 }
  0x10   : > { %s807_s20 = scalar_select %p640_p8, 1, 0 }
  0x11   : > { %s808_s21 = scalar_select %p644_p9, 1, 0 }
  0x12   : > { %p111_p11 = scmp.lt.s32.totalorder %s570_s14, 3  ;;  %p384_p1 = scmp.lt.s32.totalorder %s570_s14, 2 }
  0x13   : > { %s133_s23 = sand.u32 1, %s558_s11   ;;  %s31_s25 = sadd.s32 1, %s566_s13 }
  0x14   : > { %p651_p13 = pnand %p346_p10, %p111_p11  ;;  %p659_p0 = pnand %p384_p1, %p70_p5 }
  0x15   : > { %s360_s26 = smul.u32 24, %s133_s23  ;;  %p33_p4 = scmp.ge.s32.totalorder %s31_s25, 2 }
  0x16   : > { %p371_p7 = pneg %p651_p13  ;;  %s441_s29 = scalar_lea.hbm %s798_s0, 32 }
  0x17   : > { %p442_p6 = scmp.ne.s32.totalorder %s798_s0, %s441_s29  ;;  %p448_p5 = scmp.lt.u32.totalorder %s441_s29, %s798_s0 }
  0x18   : > { %p372_p2 = pnand %p371_p7, %p630_p3 }
  0x1a   : > { %p443_p10 = pneg %p372_p2 }
  0x1c   : > { %p444_p11 = pnand %p443_p10, %p442_p6 }
  0x1e   : > { %p445_p12 = pneg %p444_p11 }
  0x20   : > { %p450_p1 = pnand %p448_p5, %p445_p12 }
  0x22   : > { %453 = shalt.err (!%p450_p1)
}
  0x23   : > { %s572_s6 = smov [#allocation2]   ;;  %s822_s25 = smov (%p33_p4, %s31_s25), 0 }
  0x24   : > { %374 = dma.hbm_to_smem (!%p372_p2), %s798_s0, 32, %s572_s6, [#allocation5]  }
  0x25   : > { %s361_s15 = smul.u32 384, %s566_s13  ;;  %s56_s16 = ssub.s32 %s566_s13, %s822_s25 }
  0x26   : > { %s137_s27 = scalar_lea.vmem [#allocation6], %s360_s26  ;;  %p59_p7 = scmp.eq.s32.totalorder %s56_s16, 0 }
  0x27   : > { %s145_s28 = sshll.u32 %s137_s27, 4  ;;  %s686_s3 = scalar_lea.hbm %s799_s1, %s361_s15  ;;  %s688_s28 = int_to_ptr.vmem [resolvable:$true] %s145_s28 }
  0x28   : > { %s693_s4 = scalar_select %p59_p7, %s558_s11, %s61_s17  }
  0x29   : > { %s695_s5 = scalar_lea.sflag [#allocation3], %s133_s23  ;;  %s454_s6 = scalar_lea.hbm %s686_s3, 384 }
  0x2a   : > { %p455_p12 = scmp.ne.s32.totalorder %s686_s3, %s454_s6  ;;  %p456_p2 = pneg %p659_p0 }
  0x2b   : > { %s459_s8 = scalar_lea.hbm %s799_s1, 768  ;;  %p460_p10 = scmp.lt.u32.totalorder %s686_s3, %s799_s1 }
  0x2c   : > { %p457_p4 = pnand %p456_p2, %p455_p12  ;;  %p461_p11 = scmp.lt.u32.totalorder %s459_s8, %s454_s6 }
  0x2d   : > { %p463_p1 = scmp.lt.u32.totalorder %s454_s6, %s686_s3 }
  0x2e   : > { %p458_p6 = pneg %p457_p4  ;;  %p462_p5 = por %p461_p11, %p460_p10 }
  0x30   : > { %p464_p7 = por %p463_p1, %p462_p5 }
  0x32   : > { %p465_p9 = pnand %p464_p7, %p458_p6 }
  0x34   : > { %468 = shalt.err (!%p465_p9)
}
  0x35   : > { %s469_s17 = scalar_lea.vmem %s688_s28, 384  ;;  %s573_s23 = smov [#allocation6]  }
  0x36   : > { %p470_p12 = scmp.ne.s32.totalorder %s688_s28, %s469_s17  ;;  %s474_s27 = sshll.u32 %s573_s23, 4  ;;  %s475_s27 = int_to_ptr.vmem [resolvable:$false] %s474_s27 }
  0x37   : > { %s476_s29 = scalar_lea.vmem %s475_s27, 768  ;;  %p477_p3 = scmp.lt.s32.totalorder %s688_s28, %s475_s27 }
  0x38   : > { %p472_p4 = pnand %p470_p12, %p456_p2  ;;  %p478_p10 = scmp.lt.s32.totalorder %s476_s29, %s469_s17 }
  0x3a   : > { %p473_p8 = pneg %p472_p4  ;;  %p479_p11 = por %p478_p10, %p477_p3 }
  0x3c   : > { %p480_p5 = pnand %p479_p11, %p473_p8 }
  0x3e   : > { %483 = shalt.err (!%p480_p5)
}
  0x3f   : > { %s574_s30 = smov 128   ;;  %s575_s6 = smov 8  }
  0x40   : > { %378 = dma.hbm_to_vmem [thread:$0]  (!%p659_p0), %s686_s3, 384, %s688_s28, %s695_s5, %s574_s30, %s574_s30, %s575_s6  }
  0x41   : > { %157 = sbr.rel (%p651_p13) target bundleno = 127 (0x7f), region = 28  ;;  %p811_p9 = scmp.ne.s32.totalorder (!%p651_p13), %s805_s18, 0 }
  0x48   : > { %537 = dma.done.wait (%p811_p9), [#allocation5], 32  }
  0x49   : > { %539 = vsyncadd (%p811_p9), [#allocation5], 4294967264  ;;  %s730_s26 = sand.u32 1, %s554_s10   ;;  %p812_p3 = scmp.ne.s32.totalorder %s806_s19, 0 }
  0x4a   : > { %s362_s7 = smul.u32 24, %s730_s26  ;;  %s164_s8 = scalar_lea.sflag [#allocation3], %s730_s26 }
  0x4c   : > { %s167_s15 = scalar_lea.vmem [#allocation6], %s362_s7 }
  0x4d   : > { %541 = dma.done.wait (%p812_p3), %s164_s8, 384  }
  0x4e   : > { %543 = vsyncadd (%p812_p3), %s164_s8, 4294966912 }
  0x4f   : > { %172 = sfence }
  0x50   : > { %s739_s22 = sshll.u32 %s562_s12, 7  ;;  %v200_v0 = vld [vmem:[%s167_s15] sm:$0xff]  ;;  %v354_v2 = vld [vmem:[%s167_s15 + $0x8] sm:$0xff]  ;;  %v355_v3 = vld [vmem:[%s167_s15 + $0x10] sm:$0xff]  ;;  %v223_v13 = vlaneseq  ;;  %s352_s12 = sshll.u32 %s730_s26, 3 }
  0x51   : > { %s195_s18 = sld [smem:[#allocation2 + %s739_s22]]  ;;  %s196_s24 = sadd.s32 1, %s739_s22 }
  0x52   : > { %s198_s28 = sadd.s32 2, %s739_s22  ;;  %s197_s3 = sld [smem:[#allocation2 + %s196_s24]]  ;;  %v224_v15 = vshrl.u32 %v223_v13, 7  ;;  %v226_v16 = vand.u32 127, %v223_v13 }
  0x53   : > { %s199_s5 = sld [smem:[#allocation2 + %s198_s28]]  ;;  %s188_s19 = scalar_lea.vmem [#allocation7], %s352_s12 }
  0x54   : > { %v230_v17 = vmul.u32 128, %v224_v15  ;;  %s252_s16 = sshll.u32 %s188_s19, 4  ;;  %s749_s27 = scalar_lea.hbm %s800_s2, %s739_s22  ;;  %s751_s16 = int_to_ptr.vmem [resolvable:$true] %s252_s16 }
  0x55   : > { %s239_s29 = scalar_lea.sflag [#allocation4], %s730_s26  ;;  %s484_s30 = scalar_lea.vmem %s751_s16, 128 }
  0x56   : > { %v231_v18 = vadd.s32 %v230_v17, %v226_v16  ;;  %p485_p8 = scmp.ne.s32.totalorder %s751_s16, %s484_s30  ;;  %p813_p13 = scmp.ne.s32.totalorder %s807_s20, 0 }
  0x57   : > { %v201_v1 = vstv %s195_s18  ;;  %s576_s6 = smov [#allocation7]  }
  0x58   : > { %v202_v4 = vsub.f32 %v200_v0, %v201_v1  ;;  %v205_v5 = vstv %s197_s3  ;;  %vm232_vm2 = vcmp.lt.s32.totalorder %v231_v18, 256  ;;  %p486_p0 = pnand %p485_p8, %p813_p13  ;;  %s488_s7 = sshll.u32 %s576_s6, 4  ;;  %s489_s7 = int_to_ptr.vmem [resolvable:$false] %s488_s7 }
  0x59   : > { %v209_v6 = vstv %s199_s5  ;;  %v206_v7 = vsub.f32 %v354_v2, %v205_v5  ;;  %s490_s8 = scalar_lea.vmem %s489_s7, 256  ;;  %p491_p6 = scmp.lt.s32.totalorder %s751_s16, %s489_s7 }
  0x5a   : > { %v210_v8 = vsub.f32 %v355_v3, %v209_v6  ;;  %v211_v9 = vmul.f32 %v202_v4, %v202_v4  ;;  %p487_p2 = pneg %p486_p0  ;;  %p492_p1 = scmp.lt.s32.totalorder %s490_s8, %s484_s30 }
  0x5b   : > { %v212_v10 = vmul.f32 %v206_v7, %v206_v7 }
  0x5c   : > { %v214_v11 = vmul.f32 %v210_v8, %v210_v8  ;;  %p493_p7 = por %p492_p1, %p491_p6 }
  0x5d   : > { %v213_v12 = vadd.f32 %v212_v10, %v211_v9 }
  0x5e   : > { %p494_p12 = pnand %p493_p7, %p487_p2 }
  0x5f   : > { %v215_v14 = vadd.f32 %v214_v11, %v213_v12 }
  0x61   : > { %439 = vrsqrt.f32 %v215_v14  ;;  %vm218_vm0 = vcmp.eq.f32.partialorder %v215_v14, inf  ;;  %v221_v20 = vand.u32 2147483648, %v215_v14  ;;  %vm220_vm1 = vcmp.eq.f32.partialorder %v215_v14, 0.0 }
  0x6b   : > { %v440_v19 = vpop.eup %439 }
  0x6c   : > { %v217_v21 = vmul.f32 %v440_v19, %v215_v14 }
  0x6e   : > { %v219_v22 = vsel %vm218_vm0, %v215_v14, %v217_v21 }
  0x6f   : > { %v222_v23 = vsel %vm220_vm1, %v221_v20, %v219_v22 }
  0x70   : > { %v233_v24 = vsel %vm232_vm2, %v222_v23, 0.0 }
  0x71   : > { %237 = vst [vmem:[%s188_s19] sm:$0xff] %v233_v24 }
  0x72   : > { %497 = shalt.err (!%p494_p12)
}
  0x73   : > { %s498_s26 = scalar_lea.hbm %s749_s27, 128  ;;  %s502_s18 = scalar_lea.hbm %s800_s2, 256 }
  0x74   : > { %p499_p4 = scmp.ne.s32.totalorder %s749_s27, %s498_s26  ;;  %p503_p5 = scmp.lt.u32.totalorder %s749_s27, %s800_s2 }
  0x75   : > { %p504_p9 = scmp.lt.u32.totalorder %s502_s18, %s498_s26  ;;  %p506_p8 = scmp.lt.u32.totalorder %s498_s26, %s749_s27 }
  0x76   : > { %p500_p10 = pnand %p499_p4, %p813_p13 }
  0x77   : > { %p505_p3 = por %p504_p9, %p503_p5 }
  0x78   : > { %p501_p11 = pneg %p500_p10 }
  0x79   : > { %p507_p0 = por %p506_p8, %p505_p3 }
  0x7b   : > { %p508_p2 = pnand %p507_p0, %p501_p11 }
  0x7d   : > { %511 = shalt.err (!%p508_p2)
}
  0x7e   : > { %369 = dma.vmem_to_hbm [thread:$0]  (%p813_p13), %s751_s16, 128, %s749_s27, %s239_s29  }
  0x7f PF: > { %s264_s3 = sand.u32 1, %s550_s9   ;;  %p814_p6 = scmp.ne.s32.totalorder %s808_s21, 0 }
  0x80   : > { %p815_p1 = scmp.ge.s32.totalorder %s570_s14, 2  ;;  %s265_s5 = scalar_lea.sflag [#allocation4], %s264_s3 }
  0x82   : > { %p380_p7 = pnand %p815_p1, %p814_p6 }
  0x84   : > { %545 = dma.done.wait (!%p380_p7), %s265_s5, 128  }
  0x85   : > { %547 = vsyncadd (!%p380_p7), %s265_s5, 4294967168  ;;  %s19_s14 = sadd.s32 1, %s570_s14   ;;  %s816_s9 = smov %s554_s10 }
  0x86   : > { %p16_p12 = scmp.ge.s32.totalorder %s19_s14, 4   ;;  %s817_s10 = smov %s558_s11 }
  0x87   : > { %s818_s11 = smov %s693_s4  ;;  %s819_s12 = smov %s566_s13 }
  0x88   : > { %s820_s13 = smov %s822_s25  ;;  %18 = sbr.rel (!%p16_p12) target bundleno = 7 (0x7), region = 84 }
  0x8f   :  { %270 = vsyncpa [#allocation3], 1 }
  0x90   :  { %272 = vsyncpa [#allocation3 + $0x1], 1 }
  0x91   :  { %273 = vsyncpa [#allocation4], 1 }
  0x92   :  { %275 = vsyncpa [#allocation4 + $0x1], 1 }
  0x93   :  { %276 = vsyncpa [#allocation5], 1 }
  0x94   :  { %278 = vsyncpa [#allocation5 + $0x1], 1 }

</bundles_post_ra>
